<compile_context>
chip_gen: v6e
topology: v6e:2x2x1
jax: 0.10.0
libtpu: 0.0.40
codegen_flags: <defaults>
</compile_context>

<pallas_src>
import math

import jax
import jax.numpy as jnp
from jax.experimental import pallas as pl
from jax.experimental.pallas import tpu as pltpu


def _idd_kernel(x_ref, w_ref, b_ref, o_ref):
    # x_ref: (TB, Nb, N_i)   batch-tile x index-block of the input
    # w_ref: (Nb, N_i, N_o)  weights for this index-block
    # b_ref: (Nb, N_o)       bias for this index-block
    # o_ref: (TB, Nb, N_o)
    Nb = w_ref.shape[0]
    for j in range(Nb):                                   # short, static, unrolled
        xj = x_ref[:, j, :]                               # (TB, N_i)
        wj = w_ref[j]                                     # (N_i, N_o)
        yj = jnp.dot(xj, wj, preferred_element_type=jnp.float32)
        yj = yj + b_ref[j:j + 1, :].astype(jnp.float32)   # broadcast (1, N_o)
        o_ref[:, j, :] = jnp.maximum(yj, 0.0).astype(o_ref.dtype)


def _round_up(v, m):
    return ((v + m - 1) // m) * m


def _block_bytes(lead, sub, lane, itemsize):
    # VMEM footprint of a block, accounting for (8, 128) tile padding.
    return lead * _round_up(sub, 8) * _round_up(lane, 128) * itemsize


def _choose_tiles(B, N, N_i, N_o, itemsize, vmem_budget=16 * 1024 * 1024):
    """Pick (Nb, TB): as large as possible while the double-buffered per-step
    footprint fits the smallest default scoped VMEM (16 MiB on v5e)."""
    nb_cands = [d for d in range(N, 0, -1) if N % d == 0 and (d == N or d % 8 == 0)]
    tb_cands = [d for d in range(B, 0, -1) if B % d == 0]
    for nb in nb_cands:
        for tb in tb_cands:
            step = (_block_bytes(tb, nb, N_i, itemsize)      # x block
                    + _block_bytes(nb, N_i, N_o, itemsize)   # W block
                    + _block_bytes(1, nb, N_o, itemsize)     # bias block
                    + _block_bytes(tb, nb, N_o, itemsize))   # out block
            if 2 * step <= vmem_budget:                      # double-buffered
                return nb, tb
    return nb_cands[-1], tb_cands[-1]


def index_dependent_dense(x, W, b):
    """x: (..., N, N_i), W: (N, N_i, N_o), b: (N, N_o) -> (..., N, N_o) with ReLU."""
    N, N_i, N_o = W.shape
    lead = x.shape[:-2]
    B = int(math.prod(lead)) if lead else 1
    x2 = x.reshape(B, N, N_i)                    # free reshape, no transpose

    Nb, TB = _choose_tiles(B, N, N_i, N_o, jnp.dtype(x.dtype).itemsize)
    grid = (N // Nb, B // TB)                    # n-blocks outer, batch tiles inner

    out = pl.pallas_call(
        _idd_kernel,
        out_shape=jax.ShapeDtypeStruct((B, N, N_o), x.dtype),
        grid_spec=pltpu.PrefetchScalarGridSpec(
            num_scalar_prefetch=0,
            grid=grid,
            in_specs=[
                # x: batch tile x index block; N selected via index_map (no transpose)
                pl.BlockSpec((TB, Nb, N_i), lambda n, bt: (bt, n, 0)),
                # W: index block; independent of the batch axis -> fetched once per n-block
                pl.BlockSpec((Nb, N_i, N_o), lambda n, bt: (n, 0, 0)),
                # b: index block; tiny, only re-DMA'd when the n-block changes
                pl.BlockSpec((Nb, N_o), lambda n, bt: (n, 0)),
            ],
            out_specs=pl.BlockSpec((TB, Nb, N_o), lambda n, bt: (bt, n, 0)),
        ),
        compiler_params=pltpu.CompilerParams(
            dimension_semantics=("parallel", "parallel")),
    )(x2, W, b)

    return out.reshape(lead + (N, N_o))          # free reshape back


def init_params(key, N, N_i, N_o, dtype=jnp.float32):
    # Matches nn.init.xavier_uniform_ on a (N, N_i, N_o) tensor:
    # fan_in = N_i * N_o, fan_out = N * N_o (PyTorch fan calc for >2-D tensors).
    fan_in = N_i * N_o
    fan_out = N * N_o
    bound = math.sqrt(6.0 / (fan_in + fan_out))
    W = jax.random.uniform(key, (N, N_i, N_o), dtype=dtype,
                           minval=-bound, maxval=bound)
    b = jnp.zeros((N, N_o), dtype=dtype)
    return W, b


if __name__ == "__main__":
    # Small shapes consistent with the forward pass: x is (..., N, N_i).
    B, N, N_i, N_o = 2, 8, 16, 32

    key = jax.random.PRNGKey(0)
    kx, kw, kb = jax.random.split(key, 3)

    x = jax.random.normal(kx, (B, N, N_i), dtype=jnp.float32)
    W, _ = init_params(kw, N, N_i, N_o)
    # Use a nonzero bias in the demo so the bias path is actually exercised
    # (the module itself zero-initializes b).
    b = 0.1 * jax.random.normal(kb, (N, N_o), dtype=jnp.float32)

    out = jax.block_until_ready(index_dependent_dense(x, W, b))

    # Reference check (plain JAX einsum, same semantics as torch.einsum).
    ref = jnp.maximum(jnp.einsum('nij,bni->bnj', W, x) + b[None], 0.0)
    assert out.shape == (B, N, N_o)
    assert jnp.allclose(out, ref, atol=1e-5, rtol=1e-5)

    print("KERNEL_OK")
</pallas_src>

<mosaic_0001>
module attributes {stable_mosaic.version = 11 : i64} {
  func.func @_idd_kernel(%arg0: i32, %arg1: i32, %arg2: memref<2x8x16xf32, #tpu.memory_space<vmem>>, %arg3: memref<8x16x32xf32, #tpu.memory_space<vmem>>, %arg4: memref<8x32xf32, #tpu.memory_space<vmem>>, %arg5: memref<2x8x32xf32, #tpu.memory_space<vmem>>) attributes {dimension_semantics = [#tpu.dimension_semantics<parallel>, #tpu.dimension_semantics<parallel>], iteration_bounds = array<i64: 1, 1>, scalar_prefetch = 0 : i64, scratch_operands = 0 : i64, tpu.core_type = #tpu.core_type<tc>, window_params = [{transform_indices = @transform_0, window_bounds = array<i64: 2, 8, 16>}, {transform_indices = @transform_1, window_bounds = array<i64: 8, 16, 32>}, {transform_indices = @transform_2, window_bounds = array<i64: 8, 32>}, {transform_indices = @transform_3, window_bounds = array<i64: 2, 8, 32>}]} {
    %c0 = arith.constant 0 : index
    %c0_0 = arith.constant 0 : index
    %c0_1 = arith.constant 0 : index
    %0 = vector.load %arg2[%c0, %c0_0, %c0_1] : memref<2x8x16xf32, #tpu.memory_space<vmem>>, vector<2x1x16xf32>
    %1 = vector.shape_cast %0 : vector<2x1x16xf32> to vector<2x16xf32>
    %c0_2 = arith.constant 0 : index
    %c0_3 = arith.constant 0 : index
    %c0_4 = arith.constant 0 : index
    %2 = vector.load %arg3[%c0_2, %c0_3, %c0_4] : memref<8x16x32xf32, #tpu.memory_space<vmem>>, vector<1x16x32xf32>
    %3 = vector.shape_cast %2 : vector<1x16x32xf32> to vector<16x32xf32>
    %cst = arith.constant dense<0.000000e+00> : vector<2x32xf32>
    %4 = tpu.matmul %1, %3, %cst {dimension_numbers = #tpu.dot_dimension_numbers<[1], [0], [0], [1], [0, 0, 1, 1], [], []>} : vector<2x16xf32>, vector<16x32xf32>, vector<2x32xf32> -> vector<2x32xf32>
    %c0_5 = arith.constant 0 : index
    %c0_6 = arith.constant 0 : index
    %5 = vector.load %arg4[%c0_5, %c0_6] : memref<8x32xf32, #tpu.memory_space<vmem>>, vector<1x32xf32>
    %6 = vector.broadcast %5 : vector<1x32xf32> to vector<2x32xf32>
    %7 = arith.addf %4, %6 : vector<2x32xf32>
    %cst_7 = arith.constant 0.000000e+00 : f32
    %8 = vector.broadcast %cst_7 : f32 to vector<2x32xf32>
    %9 = arith.maximumf %7, %8 : vector<2x32xf32>
    %c0_8 = arith.constant 0 : index
    %c0_9 = arith.constant 0 : index
    %c0_10 = arith.constant 0 : index
    %10 = vector.load %arg5[%c0_8, %c0_9, %c0_10] : memref<2x8x32xf32, #tpu.memory_space<vmem>>, vector<2x1x32xf32>
    %11 = vector.shape_cast %10 : vector<2x1x32xf32> to vector<2x32xf32>
    %12 = vector.shape_cast %9 : vector<2x32xf32> to vector<2x1x32xf32>
    tpu.vector_store %arg5[%c0_8, %c0_9, %c0_10], %12 {strides = array<i32>} : memref<2x8x32xf32, #tpu.memory_space<vmem>>, vector<2x1x32xf32>,
    %c0_11 = arith.constant 0 : index
    %c1 = arith.constant 1 : index
    %c0_12 = arith.constant 0 : index
    %13 = vector.load %arg2[%c0_11, %c1, %c0_12] : memref<2x8x16xf32, #tpu.memory_space<vmem>>, vector<2x1x16xf32>
    %14 = vector.shape_cast %13 : vector<2x1x16xf32> to vector<2x16xf32>
    %c1_13 = arith.constant 1 : index
    %c0_14 = arith.constant 0 : index
    %c0_15 = arith.constant 0 : index
    %15 = vector.load %arg3[%c1_13, %c0_14, %c0_15] : memref<8x16x32xf32, #tpu.memory_space<vmem>>, vector<1x16x32xf32>
    %16 = vector.shape_cast %15 : vector<1x16x32xf32> to vector<16x32xf32>
    %cst_16 = arith.constant dense<0.000000e+00> : vector<2x32xf32>
    %17 = tpu.matmul %14, %16, %cst_16 {dimension_numbers = #tpu.dot_dimension_numbers<[1], [0], [0], [1], [0, 0, 1, 1], [], []>} : vector<2x16xf32>, vector<16x32xf32>, vector<2x32xf32> -> vector<2x32xf32>
    %c1_17 = arith.constant 1 : index
    %c0_18 = arith.constant 0 : index
    %18 = vector.load %arg4[%c1_17, %c0_18] : memref<8x32xf32, #tpu.memory_space<vmem>>, vector<1x32xf32>
    %19 = vector.broadcast %18 : vector<1x32xf32> to vector<2x32xf32>
    %20 = arith.addf %17, %19 : vector<2x32xf32>
    %cst_19 = arith.constant 0.000000e+00 : f32
    %21 = vector.broadcast %cst_19 : f32 to vector<2x32xf32>
    %22 = arith.maximumf %20, %21 : vector<2x32xf32>
    %c0_20 = arith.constant 0 : index
    %c1_21 = arith.constant 1 : index
    %c0_22 = arith.constant 0 : index
    %23 = vector.load %arg5[%c0_20, %c1_21, %c0_22] : memref<2x8x32xf32, #tpu.memory_space<vmem>>, vector<2x1x32xf32>
    %24 = vector.shape_cast %23 : vector<2x1x32xf32> to vector<2x32xf32>
    %25 = vector.shape_cast %22 : vector<2x32xf32> to vector<2x1x32xf32>
    tpu.vector_store %arg5[%c0_20, %c1_21, %c0_22], %25 {strides = array<i32>} : memref<2x8x32xf32, #tpu.memory_space<vmem>>, vector<2x1x32xf32>,
    %c0_23 = arith.constant 0 : index
    %c2 = arith.constant 2 : index
    %c0_24 = arith.constant 0 : index
    %26 = vector.load %arg2[%c0_23, %c2, %c0_24] : memref<2x8x16xf32, #tpu.memory_space<vmem>>, vector<2x1x16xf32>
    %27 = vector.shape_cast %26 : vector<2x1x16xf32> to vector<2x16xf32>
    %c2_25 = arith.constant 2 : index
    %c0_26 = arith.constant 0 : index
    %c0_27 = arith.constant 0 : index
    %28 = vector.load %arg3[%c2_25, %c0_26, %c0_27] : memref<8x16x32xf32, #tpu.memory_space<vmem>>, vector<1x16x32xf32>
    %29 = vector.shape_cast %28 : vector<1x16x32xf32> to vector<16x32xf32>
    %cst_28 = arith.constant dense<0.000000e+00> : vector<2x32xf32>
    %30 = tpu.matmul %27, %29, %cst_28 {dimension_numbers = #tpu.dot_dimension_numbers<[1], [0], [0], [1], [0, 0, 1, 1], [], []>} : vector<2x16xf32>, vector<16x32xf32>, vector<2x32xf32> -> vector<2x32xf32>
    %c2_29 = arith.constant 2 : index
    %c0_30 = arith.constant 0 : index
    %31 = vector.load %arg4[%c2_29, %c0_30] : memref<8x32xf32, #tpu.memory_space<vmem>>, vector<1x32xf32>
    %32 = vector.broadcast %31 : vector<1x32xf32> to vector<2x32xf32>
    %33 = arith.addf %30, %32 : vector<2x32xf32>
    %cst_31 = arith.constant 0.000000e+00 : f32
    %34 = vector.broadcast %cst_31 : f32 to vector<2x32xf32>
    %35 = arith.maximumf %33, %34 : vector<2x32xf32>
    %c0_32 = arith.constant 0 : index
    %c2_33 = arith.constant 2 : index
    %c0_34 = arith.constant 0 : index
    %36 = vector.load %arg5[%c0_32, %c2_33, %c0_34] : memref<2x8x32xf32, #tpu.memory_space<vmem>>, vector<2x1x32xf32>
    %37 = vector.shape_cast %36 : vector<2x1x32xf32> to vector<2x32xf32>
    %38 = vector.shape_cast %35 : vector<2x32xf32> to vector<2x1x32xf32>
    tpu.vector_store %arg5[%c0_32, %c2_33, %c0_34], %38 {strides = array<i32>} : memref<2x8x32xf32, #tpu.memory_space<vmem>>, vector<2x1x32xf32>,
    %c0_35 = arith.constant 0 : index
    %c3 = arith.constant 3 : index
    %c0_36 = arith.constant 0 : index
    %39 = vector.load %arg2[%c0_35, %c3, %c0_36] : memref<2x8x16xf32, #tpu.memory_space<vmem>>, vector<2x1x16xf32>
    %40 = vector.shape_cast %39 : vector<2x1x16xf32> to vector<2x16xf32>
    %c3_37 = arith.constant 3 : index
    %c0_38 = arith.constant 0 : index
    %c0_39 = arith.constant 0 : index
    %41 = vector.load %arg3[%c3_37, %c0_38, %c0_39] : memref<8x16x32xf32, #tpu.memory_space<vmem>>, vector<1x16x32xf32>
    %42 = vector.shape_cast %41 : vector<1x16x32xf32> to vector<16x32xf32>
    %cst_40 = arith.constant dense<0.000000e+00> : vector<2x32xf32>
    %43 = tpu.matmul %40, %42, %cst_40 {dimension_numbers = #tpu.dot_dimension_numbers<[1], [0], [0], [1], [0, 0, 1, 1], [], []>} : vector<2x16xf32>, vector<16x32xf32>, vector<2x32xf32> -> vector<2x32xf32>
    %c3_41 = arith.constant 3 : index
    %c0_42 = arith.constant 0 : index
    %44 = vector.load %arg4[%c3_41, %c0_42] : memref<8x32xf32, #tpu.memory_space<vmem>>, vector<1x32xf32>
    %45 = vector.broadcast %44 : vector<1x32xf32> to vector<2x32xf32>
    %46 = arith.addf %43, %45 : vector<2x32xf32>
    %cst_43 = arith.constant 0.000000e+00 : f32
    %47 = vector.broadcast %cst_43 : f32 to vector<2x32xf32>
    %48 = arith.maximumf %46, %47 : vector<2x32xf32>
    %c0_44 = arith.constant 0 : index
    %c3_45 = arith.constant 3 : index
    %c0_46 = arith.constant 0 : index
    %49 = vector.load %arg5[%c0_44, %c3_45, %c0_46] : memref<2x8x32xf32, #tpu.memory_space<vmem>>, vector<2x1x32xf32>
    %50 = vector.shape_cast %49 : vector<2x1x32xf32> to vector<2x32xf32>
    %51 = vector.shape_cast %48 : vector<2x32xf32> to vector<2x1x32xf32>
    tpu.vector_store %arg5[%c0_44, %c3_45, %c0_46], %51 {strides = array<i32>} : memref<2x8x32xf32, #tpu.memory_space<vmem>>, vector<2x1x32xf32>,
    %c0_47 = arith.constant 0 : index
    %c4 = arith.constant 4 : index
    %c0_48 = arith.constant 0 : index
    %52 = vector.load %arg2[%c0_47, %c4, %c0_48] : memref<2x8x16xf32, #tpu.memory_space<vmem>>, vector<2x1x16xf32>
    %53 = vector.shape_cast %52 : vector<2x1x16xf32> to vector<2x16xf32>
    %c4_49 = arith.constant 4 : index
    %c0_50 = arith.constant 0 : index
    %c0_51 = arith.constant 0 : index
    %54 = vector.load %arg3[%c4_49, %c0_50, %c0_51] : memref<8x16x32xf32, #tpu.memory_space<vmem>>, vector<1x16x32xf32>
    %55 = vector.shape_cast %54 : vector<1x16x32xf32> to vector<16x32xf32>
    %cst_52 = arith.constant dense<0.000000e+00> : vector<2x32xf32>
    %56 = tpu.matmul %53, %55, %cst_52 {dimension_numbers = #tpu.dot_dimension_numbers<[1], [0], [0], [1], [0, 0, 1, 1], [], []>} : vector<2x16xf32>, vector<16x32xf32>, vector<2x32xf32> -> vector<2x32xf32>
    %c4_53 = arith.constant 4 : index
    %c0_54 = arith.constant 0 : index
    %57 = vector.load %arg4[%c4_53, %c0_54] : memref<8x32xf32, #tpu.memory_space<vmem>>, vector<1x32xf32>
    %58 = vector.broadcast %57 : vector<1x32xf32> to vector<2x32xf32>
    %59 = arith.addf %56, %58 : vector<2x32xf32>
    %cst_55 = arith.constant 0.000000e+00 : f32
    %60 = vector.broadcast %cst_55 : f32 to vector<2x32xf32>
    %61 = arith.maximumf %59, %60 : vector<2x32xf32>
    %c0_56 = arith.constant 0 : index
    %c4_57 = arith.constant 4 : index
    %c0_58 = arith.constant 0 : index
    %62 = vector.load %arg5[%c0_56, %c4_57, %c0_58] : memref<2x8x32xf32, #tpu.memory_space<vmem>>, vector<2x1x32xf32>
    %63 = vector.shape_cast %62 : vector<2x1x32xf32> to vector<2x32xf32>
    %64 = vector.shape_cast %61 : vector<2x32xf32> to vector<2x1x32xf32>
    tpu.vector_store %arg5[%c0_56, %c4_57, %c0_58], %64 {strides = array<i32>} : memref<2x8x32xf32, #tpu.memory_space<vmem>>, vector<2x1x32xf32>,
    %c0_59 = arith.constant 0 : index
    %c5 = arith.constant 5 : index
    %c0_60 = arith.constant 0 : index
    %65 = vector.load %arg2[%c0_59, %c5, %c0_60] : memref<2x8x16xf32, #tpu.memory_space<vmem>>, vector<2x1x16xf32>
    %66 = vector.shape_cast %65 : vector<2x1x16xf32> to vector<2x16xf32>
    %c5_61 = arith.constant 5 : index
    %c0_62 = arith.constant 0 : index
    %c0_63 = arith.constant 0 : index
    %67 = vector.load %arg3[%c5_61, %c0_62, %c0_63] : memref<8x16x32xf32, #tpu.memory_space<vmem>>, vector<1x16x32xf32>
    %68 = vector.shape_cast %67 : vector<1x16x32xf32> to vector<16x32xf32>
    %cst_64 = arith.constant dense<0.000000e+00> : vector<2x32xf32>
    %69 = tpu.matmul %66, %68, %cst_64 {dimension_numbers = #tpu.dot_dimension_numbers<[1], [0], [0], [1], [0, 0, 1, 1], [], []>} : vector<2x16xf32>, vector<16x32xf32>, vector<2x32xf32> -> vector<2x32xf32>
    %c5_65 = arith.constant 5 : index
    %c0_66 = arith.constant 0 : index
    %70 = vector.load %arg4[%c5_65, %c0_66] : memref<8x32xf32, #tpu.memory_space<vmem>>, vector<1x32xf32>
    %71 = vector.broadcast %70 : vector<1x32xf32> to vector<2x32xf32>
    %72 = arith.addf %69, %71 : vector<2x32xf32>
    %cst_67 = arith.constant 0.000000e+00 : f32
    %73 = vector.broadcast %cst_67 : f32 to vector<2x32xf32>
    %74 = arith.maximumf %72, %73 : vector<2x32xf32>
    %c0_68 = arith.constant 0 : index
    %c5_69 = arith.constant 5 : index
    %c0_70 = arith.constant 0 : index
    %75 = vector.load %arg5[%c0_68, %c5_69, %c0_70] : memref<2x8x32xf32, #tpu.memory_space<vmem>>, vector<2x1x32xf32>
    %76 = vector.shape_cast %75 : vector<2x1x32xf32> to vector<2x32xf32>
    %77 = vector.shape_cast %74 : vector<2x32xf32> to vector<2x1x32xf32>
    tpu.vector_store %arg5[%c0_68, %c5_69, %c0_70], %77 {strides = array<i32>} : memref<2x8x32xf32, #tpu.memory_space<vmem>>, vector<2x1x32xf32>,
    %c0_71 = arith.constant 0 : index
    %c6 = arith.constant 6 : index
    %c0_72 = arith.constant 0 : index
    %78 = vector.load %arg2[%c0_71, %c6, %c0_72] : memref<2x8x16xf32, #tpu.memory_space<vmem>>, vector<2x1x16xf32>
    %79 = vector.shape_cast %78 : vector<2x1x16xf32> to vector<2x16xf32>
    %c6_73 = arith.constant 6 : index
    %c0_74 = arith.constant 0 : index
    %c0_75 = arith.constant 0 : index
    %80 = vector.load %arg3[%c6_73, %c0_74, %c0_75] : memref<8x16x32xf32, #tpu.memory_space<vmem>>, vector<1x16x32xf32>
    %81 = vector.shape_cast %80 : vector<1x16x32xf32> to vector<16x32xf32>
    %cst_76 = arith.constant dense<0.000000e+00> : vector<2x32xf32>
    %82 = tpu.matmul %79, %81, %cst_76 {dimension_numbers = #tpu.dot_dimension_numbers<[1], [0], [0], [1], [0, 0, 1, 1], [], []>} : vector<2x16xf32>, vector<16x32xf32>, vector<2x32xf32> -> vector<2x32xf32>
    %c6_77 = arith.constant 6 : index
    %c0_78 = arith.constant 0 : index
    %83 = vector.load %arg4[%c6_77, %c0_78] : memref<8x32xf32, #tpu.memory_space<vmem>>, vector<1x32xf32>
    %84 = vector.broadcast %83 : vector<1x32xf32> to vector<2x32xf32>
    %85 = arith.addf %82, %84 : vector<2x32xf32>
    %cst_79 = arith.constant 0.000000e+00 : f32
    %86 = vector.broadcast %cst_79 : f32 to vector<2x32xf32>
    %87 = arith.maximumf %85, %86 : vector<2x32xf32>
    %c0_80 = arith.constant 0 : index
    %c6_81 = arith.constant 6 : index
    %c0_82 = arith.constant 0 : index
    %88 = vector.load %arg5[%c0_80, %c6_81, %c0_82] : memref<2x8x32xf32, #tpu.memory_space<vmem>>, vector<2x1x32xf32>
    %89 = vector.shape_cast %88 : vector<2x1x32xf32> to vector<2x32xf32>
    %90 = vector.shape_cast %87 : vector<2x32xf32> to vector<2x1x32xf32>
    tpu.vector_store %arg5[%c0_80, %c6_81, %c0_82], %90 {strides = array<i32>} : memref<2x8x32xf32, #tpu.memory_space<vmem>>, vector<2x1x32xf32>,
    %c0_83 = arith.constant 0 : index
    %c7 = arith.constant 7 : index
    %c0_84 = arith.constant 0 : index
    %91 = vector.load %arg2[%c0_83, %c7, %c0_84] : memref<2x8x16xf32, #tpu.memory_space<vmem>>, vector<2x1x16xf32>
    %92 = vector.shape_cast %91 : vector<2x1x16xf32> to vector<2x16xf32>
    %c7_85 = arith.constant 7 : index
    %c0_86 = arith.constant 0 : index
    %c0_87 = arith.constant 0 : index
    %93 = vector.load %arg3[%c7_85, %c0_86, %c0_87] : memref<8x16x32xf32, #tpu.memory_space<vmem>>, vector<1x16x32xf32>
    %94 = vector.shape_cast %93 : vector<1x16x32xf32> to vector<16x32xf32>
    %cst_88 = arith.constant dense<0.000000e+00> : vector<2x32xf32>
    %95 = tpu.matmul %92, %94, %cst_88 {dimension_numbers = #tpu.dot_dimension_numbers<[1], [0], [0], [1], [0, 0, 1, 1], [], []>} : vector<2x16xf32>, vector<16x32xf32>, vector<2x32xf32> -> vector<2x32xf32>
    %c7_89 = arith.constant 7 : index
    %c0_90 = arith.constant 0 : index
    %96 = vector.load %arg4[%c7_89, %c0_90] : memref<8x32xf32, #tpu.memory_space<vmem>>, vector<1x32xf32>
    %97 = vector.broadcast %96 : vector<1x32xf32> to vector<2x32xf32>
    %98 = arith.addf %95, %97 : vector<2x32xf32>
    %cst_91 = arith.constant 0.000000e+00 : f32
    %99 = vector.broadcast %cst_91 : f32 to vector<2x32xf32>
    %100 = arith.maximumf %98, %99 : vector<2x32xf32>
    %c0_92 = arith.constant 0 : index
    %c7_93 = arith.constant 7 : index
    %c0_94 = arith.constant 0 : index
    %101 = vector.load %arg5[%c0_92, %c7_93, %c0_94] : memref<2x8x32xf32, #tpu.memory_space<vmem>>, vector<2x1x32xf32>
    %102 = vector.shape_cast %101 : vector<2x1x32xf32> to vector<2x32xf32>
    %103 = vector.shape_cast %100 : vector<2x32xf32> to vector<2x1x32xf32>
    tpu.vector_store %arg5[%c0_92, %c7_93, %c0_94], %103 {strides = array<i32>} : memref<2x8x32xf32, #tpu.memory_space<vmem>>, vector<2x1x32xf32>,
    return
  }
  func.func @transform_0(%arg0: i32, %arg1: i32) -> (i32, i32, i32) {
    %c0_i32 = arith.constant 0 : i32
    %c0_i32_0 = arith.constant 0 : i32
    return %arg1, %arg0, %c0_i32 : i32, i32, i32
  }
  func.func @transform_1(%arg0: i32, %arg1: i32) -> (i32, i32, i32) {
    %c0_i32 = arith.constant 0 : i32
    %c0_i32_0 = arith.constant 0 : i32
    %c0_i32_1 = arith.constant 0 : i32
    return %arg0, %c0_i32, %c0_i32_0 : i32, i32, i32
  }
  func.func @transform_2(%arg0: i32, %arg1: i32) -> (i32, i32) {
    %c0_i32 = arith.constant 0 : i32
    %c0_i32_0 = arith.constant 0 : i32
    return %arg0, %c0_i32 : i32, i32
  }
  func.func @transform_3(%arg0: i32, %arg1: i32) -> (i32, i32, i32) {
    %c0_i32 = arith.constant 0 : i32
    %c0_i32_0 = arith.constant 0 : i32
    return %arg1, %arg0, %c0_i32 : i32, i32, i32
  }
}

</mosaic_0001>

<bundles_post_ra>
// kernel: tpu_custom_call.1
= control target key start
LH: loop header
LB: loop body
LE: loop exit
PB: predicated region body
PF: predicated region fallthrough
CT: control target
= control target key end

     0   :  { %8 = vsyncpa [#allocation3], 0  ;;  %s1317_s0 = inlined_call_operand.hbm [shape: f32[2,8,16], index: 0, kind: input, shape index: {}]   ;;  %s1318_s1 = inlined_call_operand.hbm [shape: f32[8,16,32], index: 1, kind: input, shape index: {}]   ;;  %s1319_s2 = inlined_call_operand.hbm [shape: f32[8,32], index: 2, kind: input, shape index: {}]   ;;  %s1320_s3 = inlined_call_operand.hbm [shape: f32[2,8,32], index: 3, kind: output, shape index: {}]  }
   0x1   :  { %9 = vsyncpa [#allocation6], 0 }
   0x2   :  { %10 = vsyncpa [#allocation4], 0  ;;  %s1177_s12 = smov [#allocation5]   ;;  %s1178_s14 = smov [#allocation2]  }
   0x3   :  { %s28_s13 = sshll.u32 %s1177_s12, 4  ;;  %s16_s15 = sshll.u32 %s1178_s14, 4  ;;  %s29_s13 = int_to_ptr.vmem [resolvable:$true] %s28_s13  ;;  %s17_s15 = int_to_ptr.vmem [resolvable:$true] %s16_s15 }
   0x4   :  { %s1099_s16 = scalar_lea.vmem %s29_s13, 2048  ;;  %p1104_p1 = scmp.lt.s32.totalorder %s29_s13, %s29_s13 }
   0x5   :  { %p1100_p0 = scmp.ne.s32.totalorder %s29_s13, %s1099_s16  ;;  %p1105_p2 = scmp.lt.s32.totalorder %s1099_s16, %s1099_s16 }
   0x7   :  { %p1106_p3 = por %p1105_p2, %p1104_p1 }
   0x9   :  { %p1107_p4 = pnand %p1106_p3, %p1100_p0 }
   0xb   :  { %1110 = shalt.err (!%p1107_p4)
}
   0xc   :  { %s1179_s17 = smov 128   ;;  %s1180_s18 = smov 8  }
   0xd   :  { %34 = dma.hbm_to_vmem [thread:$0]  %s1318_s1, 2048, %s29_s13, [#allocation6], %s1179_s17, %s1179_s17, %s1180_s18  }
   0xe   :  { %s1119_s21 = scalar_lea.vmem %s17_s15, 256  ;;  %p1124_p6 = scmp.lt.s32.totalorder %s17_s15, %s17_s15 }
   0xf   :  { %p1120_p5 = scmp.ne.s32.totalorder %s17_s15, %s1119_s21  ;;  %p1125_p7 = scmp.lt.s32.totalorder %s1119_s21, %s1119_s21 }
  0x11   :  { %p1126_p8 = por %p1125_p7, %p1124_p6 }
  0x13   :  { %p1127_p9 = pnand %p1126_p8, %p1120_p5 }
  0x15   :  { %1130 = shalt.err (!%p1127_p9)
}
  0x16   :  { %22 = dma.hbm_to_vmem [thread:$0]  %s1317_s0, 256, %s17_s15, [#allocation3], %s1179_s17, %s1179_s17, %s1180_s18  }
  0x17   :  { %s1181_s24 = smov [#allocation7]  }
  0x18   :  { %s41_s25 = sshll.u32 %s1181_s24, 4  ;;  %s42_s25 = int_to_ptr.vmem [resolvable:$true] %s41_s25 }
  0x19   :  { %s1139_s26 = scalar_lea.vmem %s42_s25, 128  ;;  %p1144_p11 = scmp.lt.s32.totalorder %s42_s25, %s42_s25 }
  0x1a   :  { %p1140_p10 = scmp.ne.s32.totalorder %s42_s25, %s1139_s26  ;;  %p1145_p12 = scmp.lt.s32.totalorder %s1139_s26, %s1139_s26 }
  0x1c   :  { %p1146_p13 = por %p1145_p12, %p1144_p11 }
  0x1e   :  { %p1147_p0 = pnand %p1146_p13, %p1140_p10 }
  0x20   :  { %1150 = shalt.err (!%p1147_p0)
}
  0x21   :  { %44 = dma.hbm_to_vmem [thread:$0]  %s1319_s2, 128, %s42_s25, [#allocation6]  }
  0x22   :  { %1171 = dma.done.wait [#allocation3], 256  }
  0x23   :  { %1172 = vsyncadd [#allocation3], 4294967040 }
  0x24   :  { %1173 = dma.done.wait [#allocation6], 2176  }
  0x25   :  { %1174 = vsyncadd [#allocation6], 4294965120  ;;  %v1182_v0 = vmov 0.0   ;;  %vm1183_vm0 = vmmov 0   ;;  %v57_v1 = vld [vmem:[#allocation5 + $0x8] sm:$0xff]  ;;  %v174_v2 = vld [vmem:[#allocation5 + $0x18] sm:$0xff]  ;;  %v146_v51 = vlaneseq }
  0x26   :  { %1026 = vmatprep.subr.mxu0 %v1182_v0  ;;  %1033 = vmatprep.subr.mxu1 %v1182_v0  ;;  %v56_v3 = vld [vmem:[#allocation5] sm:$0xff]  ;;  %v173_v4 = vld [vmem:[#allocation5 + $0x10] sm:$0xff]  ;;  %v55_v6 = vld [vmem:[#allocation2 + $0x8] sm:$0x1]  ;;  %vm66_vm1 = vcmask 1041409   ;;  %vm68_vm2 = vcmask 130048  }
  0x27   :  { %1030 = vmatprep.mubr.msk.f32.mxu0 %vm1183_vm0, %v1182_v0  ;;  %1037 = vmatprep.mubr.msk.f32.mxu1 %vm1183_vm0, %v1182_v0  ;;  %v54_v5 = vld [vmem:[#allocation2] sm:$0x1]  ;;  %v65_v7 = vrot.slane %v55_v6, 7  ;;  %v170_v8 = vld [vmem:[#allocation2 + $0x1] sm:$0x1]  ;;  %v288_v11 = vld [vmem:[#allocation5 + $0x28] sm:$0xff] }
  0x28   :  { %1027 = vmatpush3.msra.mxu0 %v57_v1  ;;  %1034 = vmatpush3.msra.mxu1 %v174_v2  ;;  %v171_v9 = vld [vmem:[#allocation2 + $0x9] sm:$0x1]  ;;  %v284_v14 = vld [vmem:[#allocation2 + $0x2] sm:$0x1]  ;;  %v285_v15 = vld [vmem:[#allocation2 + $0xa] sm:$0x1] }
  0x29   :  { %1028 = vmatprep.subr.mxu0 %v1182_v0  ;;  %1035 = vmatprep.subr.mxu1 %v1182_v0  ;;  %v182_v10 = vrot.slane %v171_v9, 7  ;;  %v67_v12 = vsel %vm66_vm1, %v65_v7, %v54_v5  ;;  %v402_v13 = vld [vmem:[#allocation5 + $0x38] sm:$0xff]  ;;  %v287_v17 = vld [vmem:[#allocation5 + $0x20] sm:$0xff]  ;;  %v296_v18 = vrot.slane %v285_v15, 7  ;;  %v398_v19 = vld [vmem:[#allocation2 + $0x3] sm:$0x1] }
  0x2a   :  { %1029 = vmatpush3.msra.mxu0 %v56_v3  ;;  %1036 = vmatpush3.msra.mxu1 %v173_v4  ;;  %v399_v20 = vld [vmem:[#allocation2 + $0xb] sm:$0x1]  ;;  %v401_v21 = vld [vmem:[#allocation5 + $0x30] sm:$0xff]  ;;  %v513_v24 = vld [vmem:[#allocation2 + $0xc] sm:$0x1]  ;;  %v147_v53 = vshrl.u32 %v146_v51, 7 }
  0x2b   :  { %1040 = vmatprep.subr.mxu0 %v1182_v0  ;;  %1047 = vmatprep.subr.mxu1 %v1182_v0  ;;  %v183_v16 = vsel %vm66_vm1, %v182_v10, %v170_v8  ;;  %v410_v22 = vrot.slane %v399_v20, 7  ;;  %v297_v23 = vsel %vm66_vm1, %v296_v18, %v284_v14  ;;  %v627_v25 = vld [vmem:[#allocation2 + $0xd] sm:$0x1]  ;;  %v516_v27 = vld [vmem:[#allocation5 + $0x48] sm:$0xff]  ;;  %v524_v28 = vrot.slane %v513_v24, 7  ;;  %v515_v32 = vld [vmem:[#allocation5 + $0x40] sm:$0xff] }
  0x2c   :  { %1031 = vmatmul.mubr.msk.f32.vlgmr.msra.gmra.mxu0 %vm68_vm2, %v67_v12  ;;  %1038 = vmatmul.mubr.msk.f32.vlgmr.msra.gmra.mxu1 %vm68_vm2, %v183_v16  ;;  %v630_v29 = vld [vmem:[#allocation5 + $0x58] sm:$0xff]  ;;  %v512_v30 = vld [vmem:[#allocation2 + $0x4] sm:$0x1]  ;;  %v638_v31 = vrot.slane %v627_v25, 7  ;;  %v626_v33 = vld [vmem:[#allocation2 + $0x5] sm:$0x1] }
  0x2d   :  { %1041 = vmatpush3.msra.mxu0 %v288_v11  ;;  %1048 = vmatpush3.msra.mxu1 %v402_v13  ;;  %v411_v26 = vsel %vm66_vm1, %v410_v22, %v398_v19  ;;  %v629_v34 = vld [vmem:[#allocation5 + $0x50] sm:$0xff]  ;;  %v741_v35 = vld [vmem:[#allocation2 + $0xe] sm:$0x1]  ;;  %v525_v36 = vsel %vm66_vm1, %v524_v28, %v512_v30  ;;  %v855_v37 = vld [vmem:[#allocation2 + $0xf] sm:$0x1]  ;;  %vm167_vm3 = vcmask 253952  }
  0x2e   :  { %1042 = vmatprep.subr.mxu0 %v1182_v0  ;;  %1049 = vmatprep.subr.mxu1 %v1182_v0  ;;  %v639_v38 = vsel %vm66_vm1, %v638_v31, %v626_v33  ;;  %v744_v39 = vld [vmem:[#allocation5 + $0x68] sm:$0xff]  ;;  %v752_v40 = vrot.slane %v741_v35, 7  ;;  %v858_v41 = vld [vmem:[#allocation5 + $0x78] sm:$0xff]  ;;  %v740_v42 = vld [vmem:[#allocation2 + $0x6] sm:$0x1]  ;;  %v866_v43 = vrot.slane %v855_v37, 7 }
  0x2f   :  { %1043 = vmatpush3.msra.mxu0 %v287_v17  ;;  %1044 = vmatprep.mubr.msk.f32.mxu0 %vm1183_vm0, %v1182_v0  ;;  %v743_v44 = vld [vmem:[#allocation5 + $0x60] sm:$0xff]  ;;  %v854_v45 = vld [vmem:[#allocation2 + $0x7] sm:$0x1]  ;;  %v1184_v49 = vmov 1966171168   ;;  %s1185_s0 = smov [#allocation8]  }
  0x30   :  { %1050 = vmatpush3.msra.mxu1 %v401_v21  ;;  %1051 = vmatprep.mubr.msk.f32.mxu1 %vm1183_vm0, %v1182_v0  ;;  %v857_v46 = vld [vmem:[#allocation5 + $0x70] sm:$0xff]  ;;  %v753_v47 = vsel %vm66_vm1, %v752_v40, %v740_v42  ;;  %v867_v48 = vsel %vm66_vm1, %v866_v43, %v854_v45  ;;  %v144_v50 = vunpack.c.l.s4 %v1184_v49  ;;  %v986_v54 = vld [vmem:[#allocation7] ss:$0 sm:$0xff]  ;;  %v988_v55 = vld [vmem:[#allocation7 + $0x1] ss:$0 sm:$0xff]  ;;  %s973_s2 = sshll.u32 %s1185_s0, 4  ;;  %s974_s2 = int_to_ptr.vmem [resolvable:$true] %s973_s2 }
  0x31   :  { %1045 = vmatmul.mubr.msk.f32.vlgmr.msra.gmra.mxu0 %vm68_vm2, %v297_v23  ;;  %1052 = vmatmul.mubr.msk.f32.vlgmr.msra.gmra.mxu1 %vm68_vm2, %v411_v26  ;;  %v992_v2 = vld [vmem:[#allocation7 + $0x3] ss:$0 sm:$0xff]  ;;  %v994_v18 = vld [vmem:[#allocation7 + $0x4] ss:$0 sm:$0xff]  ;;  %v996_v21 = vld [vmem:[#allocation7 + $0x5] ss:$0 sm:$0xff]  ;;  %p1156_p2 = scmp.lt.s32.totalorder %s974_s2, %s974_s2 }
  0x32   :  { %1054 = vmatprep.subr.mxu0 %v1182_v0  ;;  %1061 = vmatprep.subr.mxu1 %v1182_v0  ;;  %v145_v52 = vunpack.c.0.s8 %v144_v50  ;;  %v998_v37 = vld [vmem:[#allocation7 + $0x6] ss:$0 sm:$0xff]  ;;  %s1151_s28 = scalar_lea.vmem %s974_s2, 256 }
  0x33   :  { %1055 = vmatpush3.msra.mxu0 %v516_v27  ;;  %1062 = vmatpush3.msra.mxu1 %v630_v29  ;;  %p1152_p1 = scmp.ne.s32.totalorder %s974_s2, %s1151_s28  ;;  %p1157_p3 = scmp.lt.s32.totalorder %s1151_s28, %s1151_s28 }
  0x34   :  { %1056 = vmatprep.subr.mxu0 %v1182_v0  ;;  %1063 = vmatprep.subr.mxu1 %v1182_v0  ;;  %v1269_v58 = vsub.s32 %v145_v52, %v147_v53 }
  0x35   :  { %1057 = vmatpush3.msra.mxu0 %v515_v32  ;;  %1058 = vmatprep.mubr.msk.f32.mxu0 %vm1183_vm0, %v1182_v0  ;;  %p1158_p4 = por %p1157_p3, %p1156_p2 }
  0x36   :  { %1064 = vmatpush3.msra.mxu1 %v629_v34  ;;  %1065 = vmatprep.mubr.msk.f32.mxu1 %vm1183_vm0, %v1182_v0 }
  0x37   :  { %1059 = vmatmul.mubr.msk.f32.vlgmr.msra.gmra.mxu0 %vm68_vm2, %v525_v36  ;;  %1066 = vmatmul.mubr.msk.f32.vlgmr.msra.gmra.mxu1 %vm68_vm2, %v639_v38  ;;  %p1159_p5 = pnand %p1158_p4, %p1152_p1 }
  0x38   :  { %1068 = vmatprep.subr.mxu0 %v1182_v0  ;;  %1075 = vmatprep.subr.mxu1 %v1182_v0 }
  0x39   :  { %1069 = vmatpush3.msra.mxu0 %v744_v39  ;;  %1076 = vmatpush3.msra.mxu1 %v858_v41  ;;  %v1000_v39 = vld [vmem:[#allocation7 + $0x7] ss:$0 sm:$0xff] }
  0x3a   :  { %1070 = vmatprep.subr.mxu0 %v1182_v0  ;;  %1077 = vmatprep.subr.mxu1 %v1182_v0 }
  0x3b   :  { %1071 = vmatpush3.msra.mxu0 %v743_v44  ;;  %1072 = vmatprep.mubr.msk.f32.mxu0 %vm1183_vm0, %v1182_v0 }
  0x3c   :  { %1078 = vmatpush3.msra.mxu1 %v857_v46  ;;  %1079 = vmatprep.mubr.msk.f32.mxu1 %vm1183_vm0, %v1182_v0  ;;  %v990_v0 = vld [vmem:[#allocation7 + $0x2] ss:$0 sm:$0xff] }
  0x3d   :  { %1073 = vmatmul.mubr.msk.f32.vlgmr.msra.gmra.mxu0 %vm68_vm2, %v753_v47  ;;  %1080 = vmatmul.mubr.msk.f32.vlgmr.msra.gmra.mxu1 %vm68_vm2, %v867_v48 }
  0xec   :  { %v137_v56 = vpop.f32.mrf.mxu0  ;;  %v252_v59 = vpop.f32.mrf.mxu1 }
  0xed   :  { %v138_v57 = vadd.f32 %v986_v54, %v137_v56  ;;  %v253_v60 = vadd.f32 %v988_v55, %v252_v59 }
  0xee   :  { %v1032_v61 = vpop.f32.mrf.mxu0  ;;  %v1039_v63 = vpop.f32.mrf.mxu1 }
  0xef   :  { %v141_v62 = vmax.f32 %v138_v57, 0.0  ;;  %v256_v1 = vmax.f32 %v253_v60, 0.0 }
  0xf1   :  { %v149_v3 = vrot.slane %v141_v62, %v1269_v58  ;;  %v366_v4 = vpop.f32.mrf.mxu0  ;;  %v264_v5 = vrot.slane %v256_v1, %v1269_v58  ;;  %v480_v7 = vpop.f32.mrf.mxu1 }
  0xf2   :  { %v367_v6 = vadd.f32 %v990_v0, %v366_v4  ;;  %v481_v10 = vadd.f32 %v992_v2, %v480_v7 }
  0xf3   :  { %v150_v8 = vcombine.high %v149_v3, %v149_v3  ;;  %v157_v9 = vrot.slane %v149_v3, %v1269_v58  ;;  %v1046_v11 = vpop.f32.mrf.mxu0  ;;  %v265_v12 = vcombine.high %v264_v5, %v264_v5  ;;  %v272_v13 = vrot.slane %v264_v5, %v1269_v58  ;;  %v1053_v15 = vpop.f32.mrf.mxu1 }
  0xf4   :  { %v370_v14 = vmax.f32 %v367_v6, 0.0  ;;  %v484_v17 = vmax.f32 %v481_v10, 0.0 }
  0xf5   :  { %v164_v16 = vrot.slane %v150_v8, %v1269_v58  ;;  %168 = vst.msk [vmem:[#allocation8] sm:$0x1] %vm167_vm3, %v157_v9  ;;  %v279_v19 = vrot.slane %v265_v12, %v1269_v58  ;;  %282 = vst.msk [vmem:[#allocation8 + $0x1] sm:$0x1] %vm167_vm3, %v272_v13 }
  0xf6   :  { %v378_v20 = vrot.slane %v370_v14, %v1269_v58  ;;  %v492_v22 = vrot.slane %v484_v17, %v1269_v58 }
  0xf7   :  { %169 = vst.msk [vmem:[#allocation8 + $0x8] sm:$0x1] %vm167_vm3, %v164_v16  ;;  %v594_v23 = vpop.f32.mrf.mxu0  ;;  %283 = vst.msk [vmem:[#allocation8 + $0x9] sm:$0x1] %vm167_vm3, %v279_v19  ;;  %v708_v27 = vpop.f32.mrf.mxu1 }
  0xf8   :  { %v379_v24 = vcombine.high %v378_v20, %v378_v20  ;;  %v386_v25 = vrot.slane %v378_v20, %v1269_v58  ;;  %v595_v26 = vadd.f32 %v994_v18, %v594_v23  ;;  %v493_v28 = vcombine.high %v492_v22, %v492_v22 }
  0xf9   :  { %v500_v29 = vrot.slane %v492_v22, %v1269_v58  ;;  %v709_v30 = vadd.f32 %v996_v21, %v708_v27  ;;  %v1060_v31 = vpop.f32.mrf.mxu0  ;;  %v1067_v34 = vpop.f32.mrf.mxu1 }
  0xfa   :  { %v393_v32 = vrot.slane %v379_v24, %v1269_v58  ;;  %396 = vst.msk [vmem:[#allocation8 + $0x2] sm:$0x1] %vm167_vm3, %v386_v25  ;;  %v598_v33 = vmax.f32 %v595_v26, 0.0  ;;  %v507_v35 = vrot.slane %v493_v28, %v1269_v58 }
  0xfb   :  { %510 = vst.msk [vmem:[#allocation8 + $0x3] sm:$0x1] %vm167_vm3, %v500_v29  ;;  %v712_v36 = vmax.f32 %v709_v30, 0.0 }
  0xfc   :  { %397 = vst.msk [vmem:[#allocation8 + $0xa] sm:$0x1] %vm167_vm3, %v393_v32  ;;  %v606_v38 = vrot.slane %v598_v33, %v1269_v58  ;;  %511 = vst.msk [vmem:[#allocation8 + $0xb] sm:$0x1] %vm167_vm3, %v507_v35 }
  0xfd   :  { %v720_v40 = vrot.slane %v712_v36, %v1269_v58  ;;  %v822_v41 = vpop.f32.mrf.mxu0  ;;  %v936_v45 = vpop.f32.mrf.mxu1 }
  0xfe   :  { %v607_v42 = vcombine.high %v606_v38, %v606_v38  ;;  %v614_v43 = vrot.slane %v606_v38, %v1269_v58  ;;  %v823_v44 = vadd.f32 %v998_v37, %v822_v41  ;;  %v937_v48 = vadd.f32 %v1000_v39, %v936_v45 }
  0xff   :  { %v721_v46 = vcombine.high %v720_v40, %v720_v40  ;;  %v728_v47 = vrot.slane %v720_v40, %v1269_v58  ;;  %v1074_v49 = vpop.f32.mrf.mxu0  ;;  %v1081_v52 = vpop.f32.mrf.mxu1 }
 0x100   :  { %v621_v50 = vrot.slane %v607_v42, %v1269_v58  ;;  %624 = vst.msk [vmem:[#allocation8 + $0x4] sm:$0x1] %vm167_vm3, %v614_v43  ;;  %v826_v51 = vmax.f32 %v823_v44, 0.0  ;;  %v940_v54 = vmax.f32 %v937_v48, 0.0 }
 0x101   :  { %v735_v53 = vrot.slane %v721_v46, %v1269_v58  ;;  %738 = vst.msk [vmem:[#allocation8 + $0x5] sm:$0x1] %vm167_vm3, %v728_v47 }
 0x102   :  { %625 = vst.msk [vmem:[#allocation8 + $0xc] sm:$0x1] %vm167_vm3, %v621_v50  ;;  %v834_v55 = vrot.slane %v826_v51, %v1269_v58  ;;  %v948_v56 = vrot.slane %v940_v54, %v1269_v58 }
 0x103   :  { %739 = vst.msk [vmem:[#allocation8 + $0xd] sm:$0x1] %vm167_vm3, %v735_v53 }
 0x104   :  { %v835_v57 = vcombine.high %v834_v55, %v834_v55  ;;  %v842_v59 = vrot.slane %v834_v55, %v1269_v58  ;;  %v949_v60 = vcombine.high %v948_v56, %v948_v56  ;;  %v956_v61 = vrot.slane %v948_v56, %v1269_v58 }
 0x106   :  { %v849_v62 = vrot.slane %v835_v57, %v1269_v58  ;;  %852 = vst.msk [vmem:[#allocation8 + $0x6] sm:$0x1] %vm167_vm3, %v842_v59  ;;  %v963_v63 = vrot.slane %v949_v60, %v1269_v58  ;;  %966 = vst.msk [vmem:[#allocation8 + $0x7] sm:$0x1] %vm167_vm3, %v956_v61 }
 0x108   :  { %853 = vst.msk [vmem:[#allocation8 + $0xe] sm:$0x1] %vm167_vm3, %v849_v62  ;;  %967 = vst.msk [vmem:[#allocation8 + $0xf] sm:$0x1] %vm167_vm3, %v963_v63 }
 0x109   :  { %1162 = shalt.err (!%p1159_p5)
}
 0x10a   :  { %979 = dma.vmem_to_hbm [thread:$0]  %s974_s2, 256, %s1320_s3, [#allocation4], %s1179_s17, %s1179_s17, %s1180_s18  }
 0x10b   :  { %1175 = dma.done.wait [#allocation4], 256  }
 0x10c   :  { %1176 = vsyncadd [#allocation4], 4294967040 }
 0x10d   :  { %983 = vsyncpa [#allocation3], 1 }
 0x10e   :  { %984 = vsyncpa [#allocation6], 1 }
 0x10f   :  { %985 = vsyncpa [#allocation4], 1 }

</bundles_post_ra>
